<compile_context>
chip_gen: v7x
topology: tpu7x:2x2x1
jax: 0.10.0
libtpu: 0.0.40
codegen_flags: <defaults>
</compile_context>

<pallas_src>
import numpy as np
import jax
import jax.numpy as jnp
from jax.experimental import pallas as pl
from jax.experimental.pallas import tpu as pltpu

_VMEM_LIMIT = 48 * 1024 * 1024  # safe on v5e/v6e (128 MiB) and v7x (64 MiB)


def _round_up(x, m):
    return (x + m - 1) // m * m


def _pad2(a, rows, cols):
    r, c = a.shape
    return jnp.pad(a, ((0, rows - r), (0, cols - c)))


# -----------------------------------------------------------------------------
# Pallas kernels
# -----------------------------------------------------------------------------
def _make_stats_kernel(n_valid_rows, row_tile):
    """Pass A of one MLP layer: per-channel sum / sum-of-squares of conv out."""

    def kernel(x_ref, w_ref, b_ref, sum_ref, ssq_ref):
        i = pl.program_id(0)
        y = jnp.dot(x_ref[...], w_ref[...],
                    preferred_element_type=jnp.float32) + b_ref[...]
        # Mask padded rows (global row index >= n_valid_rows). The masked
        # column-sum is a (1,TM)x(TM,C) matmul -> runs on the MXU.
        row = i * row_tile + jax.lax.broadcasted_iota(jnp.int32, (1, row_tile), 1)
        mvec = (row < n_valid_rows).astype(jnp.float32)
        s = jnp.dot(mvec, y, preferred_element_type=jnp.float32)        # [1, C]
        ss = jnp.dot(mvec, y * y, preferred_element_type=jnp.float32)   # [1, C]

        @pl.when(i == 0)
        def _():
            sum_ref[...] = jnp.zeros_like(sum_ref)
            ssq_ref[...] = jnp.zeros_like(ssq_ref)

        sum_ref[...] += s
        ssq_ref[...] += ss

    return kernel


def _apply_kernel(x_ref, w_ref, b_ref, o_ref):
    """Pass B of one MLP layer: relu(x @ W_folded + b_folded); BN pre-folded."""
    y = jnp.dot(x_ref[...], w_ref[...],
                preferred_element_type=jnp.float32) + b_ref[...]
    o_ref[...] = jnp.maximum(y, 0.0).astype(o_ref.dtype)


def _mlp_layer(h, n_valid_rows, row_tile, w_p, b_p, g_p, beta_p, eps):
    rows_p, cin_p = h.shape
    cout_p = w_p.shape[1]
    n_tiles = rows_p // row_tile

    # ---- Pass A: batch statistics of the conv output (tiled reduction) ----
    ssum, ssq = pl.pallas_call(
        _make_stats_kernel(n_valid_rows, row_tile),
        grid=(n_tiles,),
        out_shape=(jax.ShapeDtypeStruct((1, cout_p), jnp.float32),
                   jax.ShapeDtypeStruct((1, cout_p), jnp.float32)),
        in_specs=[pl.BlockSpec((row_tile, cin_p), lambda i: (i, 0)),
                  pl.BlockSpec((cin_p, cout_p), lambda i: (0, 0)),
                  pl.BlockSpec((1, cout_p), lambda i: (0, 0))],
        out_specs=(pl.BlockSpec((1, cout_p), lambda i: (0, 0)),
                   pl.BlockSpec((1, cout_p), lambda i: (0, 0))),
        compiler_params=pltpu.CompilerParams(
            dimension_semantics=("arbitrary",),
            vmem_limit_bytes=_VMEM_LIMIT),
    )(h, w_p, b_p)

    # Fold BatchNorm (training stats) into the conv weight & bias:
    #   relu(((x@W + b) - mu) * gamma * rsqrt(var+eps) + beta)
    # = relu( x @ (W*s) + ((b - mu)*s + beta) ),   s = gamma*rsqrt(var+eps)
    inv_n = 1.0 / float(n_valid_rows)
    mu = ssum * inv_n
    var = jnp.maximum(ssq * inv_n - mu * mu, 0.0)
    scale = g_p * jax.lax.rsqrt(var + eps)
    w_fold = w_p * scale
    b_fold = (b_p - mu) * scale + beta_p

    # ---- Pass B: fused conv + BN + ReLU, row-tiled, parallel across cores ----
    out = pl.pallas_call(
        _apply_kernel,
        grid=(n_tiles,),
        out_shape=jax.ShapeDtypeStruct((rows_p, cout_p), jnp.float32),
        in_specs=[pl.BlockSpec((row_tile, cin_p), lambda i: (i, 0)),
                  pl.BlockSpec((cin_p, cout_p), lambda i: (0, 0)),
                  pl.BlockSpec((1, cout_p), lambda i: (0, 0))],
        out_specs=pl.BlockSpec((row_tile, cout_p), lambda i: (i, 0)),
        compiler_params=pltpu.CompilerParams(
            dimension_semantics=("parallel",),
            vmem_limit_bytes=_VMEM_LIMIT),
    )(h, w_fold, b_fold)
    return out


# -----------------------------------------------------------------------------
# Full FeaPropagate forward
# -----------------------------------------------------------------------------
def fea_propagate_forward(xyz1, xyz2, points1, points2, params,
                          row_tile=None, eps=1e-5):
    """xyz1 [B,3,N], xyz2 [B,3,S], points1 [B,D1,N] or None, points2 [B,D2,S]
       -> new_points [B, mlp[-1], N]"""
    B, _, N = xyz1.shape
    S = xyz2.shape[2]

    x1 = jnp.transpose(xyz1, (0, 2, 1)).astype(jnp.float32)      # [B,N,3]
    x2 = jnp.transpose(xyz2, (0, 2, 1)).astype(jnp.float32)      # [B,S,3]
    p2 = jnp.transpose(points2, (0, 2, 1)).astype(jnp.float32)   # [B,S,D2]

    # ---- 3-NN inverse-distance interpolation (data-dependent -> plain JAX) ----
    if S == 1:
        interp = jnp.broadcast_to(p2, (B, N, p2.shape[-1]))
    else:
        d = (-2.0 * jnp.einsum('bnc,bsc->bns', x1, x2)
             + jnp.sum(x1 * x1, -1)[:, :, None]
             + jnp.sum(x2 * x2, -1)[:, None, :])
        neg_d3, idx3 = jax.lax.top_k(-d, 3)           # 3 smallest distances
        dist3 = -neg_d3
        recip = 1.0 / (dist3 + 1e-8)
        weight = recip / jnp.sum(recip, axis=2, keepdims=True)
        gathered = jax.vmap(lambda pts, idx: pts[idx])(p2, idx3)  # [B,N,3,D2]
        interp = jnp.sum(gathered * weight[..., None], axis=2)    # [B,N,D2]

    if points1 is not None:
        p1 = jnp.transpose(points1, (0, 2, 1)).astype(jnp.float32)
        feats = jnp.concatenate([p1, interp], axis=-1)
    else:
        feats = interp

    rows = B * N
    cin = feats.shape[-1]
    x = feats.reshape(rows, cin)

    if row_tile is None:
        row_tile = 1024 if rows >= 4096 else _round_up(min(max(rows, 8), 256), 8)
    rows_p = _round_up(rows, row_tile)
    cin_p = _round_up(cin, 128)           # lane-dense channel padding
    h = _pad2(x, rows_p, cin_p)           # padded rows/channels are zero

    for (w, b, g, beta) in params:
        cout = w.shape[1]
        cout_p = _round_up(cout, 128)
        cin_cur = h.shape[1]
        w_p = _pad2(w.astype(jnp.float32), cin_cur, cout_p)
        b_p = _pad2(b.astype(jnp.float32), 1, cout_p)
        g_p = _pad2(g.astype(jnp.float32), 1, cout_p)
        beta_p = _pad2(beta.astype(jnp.float32), 1, cout_p)
        h = _mlp_layer(h, rows, row_tile, w_p, b_p, g_p, beta_p, eps)

    cout_last = params[-1][0].shape[1]
    out = h[:rows, :cout_last].reshape(B, N, cout_last)
    return jnp.transpose(out, (0, 2, 1))                          # [B, C', N]


_fea_propagate_jit = jax.jit(fea_propagate_forward,
                             static_argnames=("row_tile", "eps"))


# -----------------------------------------------------------------------------
# Deterministic parameter init (Conv1d weight/bias + BatchNorm1d gamma/beta)
# -----------------------------------------------------------------------------
def init_params(key, in_channel, mlp):
    params = []
    last = in_channel
    for out_c in mlp:
        key, k1, k2, k3, k4 = jax.random.split(key, 5)
        w = jax.random.normal(k1, (last, out_c), jnp.float32) * (2.0 / last) ** 0.5
        b = 0.1 * jax.random.normal(k2, (1, out_c), jnp.float32)
        gamma = 1.0 + 0.1 * jax.random.normal(k3, (1, out_c), jnp.float32)
        beta = 0.1 * jax.random.normal(k4, (1, out_c), jnp.float32)
        params.append((w, b, gamma, beta))
        last = out_c
    return params


# -----------------------------------------------------------------------------
# Pure NumPy reference (mirrors the PyTorch module, BN in training mode)
# -----------------------------------------------------------------------------
def fea_propagate_ref(xyz1, xyz2, points1, points2, params, eps=1e-5):
    xyz1 = np.asarray(xyz1, np.float64).transpose(0, 2, 1)
    xyz2 = np.asarray(xyz2, np.float64).transpose(0, 2, 1)
    p2 = np.asarray(points2, np.float64).transpose(0, 2, 1)
    B, N, _ = xyz1.shape
    S = xyz2.shape[1]
    if S == 1:
        interp = np.repeat(p2, N, axis=1)
    else:
        d = (-2.0 * xyz1 @ xyz2.transpose(0, 2, 1)
             + (xyz1 ** 2).sum(-1)[:, :, None]
             + (xyz2 ** 2).sum(-1)[:, None, :])
        idx = np.argsort(d, axis=-1, kind="stable")[:, :, :3]
        dist3 = np.take_along_axis(d, idx, axis=-1)
        recip = 1.0 / (dist3 + 1e-8)
        weight = recip / recip.sum(-1, keepdims=True)
        gathered = np.stack([p2[b][idx[b]] for b in range(B)], axis=0)
        interp = (gathered * weight[..., None]).sum(axis=2)
    if points1 is not None:
        p1 = np.asarray(points1, np.float64).transpose(0, 2, 1)
        feats = np.concatenate([p1, interp], axis=-1)
    else:
        feats = interp
    h = feats.reshape(B * N, -1).astype(np.float32)
    for (w, b, g, beta) in params:
        h = h @ np.asarray(w, np.float32) + np.asarray(b, np.float32)
        mu = h.mean(0, keepdims=True)
        var = ((h - mu) ** 2).mean(0, keepdims=True)
        h = (h - mu) / np.sqrt(var + eps) * np.asarray(g, np.float32) \
            + np.asarray(beta, np.float32)
        h = np.maximum(h, 0.0)
    return h.reshape(B, N, -1).transpose(0, 2, 1)


if __name__ == "__main__":
    B, N, S = 2, 20, 8        # N points to upsample to, S sampled points
    D1, D2 = 4, 6             # feature channels of points1 / points2
    mlp = [16, 32]
    in_channel = D1 + D2

    key = jax.random.PRNGKey(0)
    k1, k2, k3, k4, kp = jax.random.split(key, 5)
    xyz1 = jax.random.normal(k1, (B, 3, N), jnp.float32)
    xyz2 = jax.random.normal(k2, (B, 3, S), jnp.float32)
    points1 = jax.random.normal(k3, (B, D1, N), jnp.float32)
    points2 = jax.random.normal(k4, (B, D2, S), jnp.float32)
    params = init_params(kp, in_channel, mlp)

    # row_tile=16 -> rows=40 padded to 48, 3 grid steps: exercises the tiled
    # pipeline, the resident stats accumulator, and the padded-row mask.
    out = _fea_propagate_jit(xyz1, xyz2, points1, points2, params, row_tile=16)
    out = jax.block_until_ready(out)
    assert out.shape == (B, mlp[-1], N)

    ref = fea_propagate_ref(
        np.asarray(xyz1), np.asarray(xyz2), np.asarray(points1),
        np.asarray(points2),
        [tuple(np.asarray(p) for p in layer) for layer in params])
    np.testing.assert_allclose(np.asarray(out), ref, rtol=2e-3, atol=2e-3)

    print("KERNEL_OK")
</pallas_src>

<mosaic_0001>
module attributes {stable_mosaic.version = 11 : i64} {
  func.func @kernel(%arg0: i32, %arg1: memref<16x128xf32, #tpu.memory_space<vmem>>, %arg2: memref<128x128xf32, #tpu.memory_space<vmem>>, %arg3: memref<1x128xf32, #tpu.memory_space<vmem>>, %arg4: memref<1x128xf32, #tpu.memory_space<vmem>>, %arg5: memref<1x128xf32, #tpu.memory_space<vmem>>) attributes {dimension_semantics = [#tpu.dimension_semantics<arbitrary>], iteration_bounds = array<i64: 3>, scalar_prefetch = 0 : i64, scratch_operands = 0 : i64, tpu.core_type = #tpu.core_type<tc>, window_params = [{transform_indices = @transform_0, window_bounds = array<i64: 16, 128>}, {pipeline_mode = #tpu.pipeline_mode<synchronous>, transform_indices = @transform_1, window_bounds = array<i64: 128, 128>}, {pipeline_mode = #tpu.pipeline_mode<synchronous>, transform_indices = @transform_2, window_bounds = array<i64: 1, 128>}, {pipeline_mode = #tpu.pipeline_mode<synchronous>, transform_indices = @transform_3, window_bounds = array<i64: 1, 128>}, {pipeline_mode = #tpu.pipeline_mode<synchronous>, transform_indices = @transform_4, window_bounds = array<i64: 1, 128>}]} {
    %c0 = arith.constant 0 : index
    %c0_0 = arith.constant 0 : index
    %0 = vector.load %arg1[%c0, %c0_0] : memref<16x128xf32, #tpu.memory_space<vmem>>, vector<16x128xf32>
    %c0_1 = arith.constant 0 : index
    %c0_2 = arith.constant 0 : index
    %1 = vector.load %arg2[%c0_1, %c0_2] : memref<128x128xf32, #tpu.memory_space<vmem>>, vector<128x128xf32>
    %cst = arith.constant dense<0.000000e+00> : vector<16x128xf32>
    %2 = tpu.matmul %0, %1, %cst {dimension_numbers = #tpu.dot_dimension_numbers<[1], [0], [0], [1], [0, 0, 1, 1], [], []>} : vector<16x128xf32>, vector<128x128xf32>, vector<16x128xf32> -> vector<16x128xf32>
    %c0_3 = arith.constant 0 : index
    %c0_4 = arith.constant 0 : index
    %3 = vector.load %arg3[%c0_3, %c0_4] : memref<1x128xf32, #tpu.memory_space<vmem>>, vector<1x128xf32>
    %4 = vector.broadcast %3 : vector<1x128xf32> to vector<16x128xf32>
    %5 = arith.addf %2, %4 : vector<16x128xf32>
    %c16_i32 = arith.constant 16 : i32
    %6 = arith.muli %arg0, %c16_i32 : i32
    %7 = tpu.iota {dimensions = array<i32: 1>} : vector<1x16xi32>
    %8 = vector.broadcast %6 : i32 to vector<1x16xi32>
    %9 = arith.addi %8, %7 : vector<1x16xi32>
    %c40_i32 = arith.constant 40 : i32
    %10 = vector.broadcast %c40_i32 : i32 to vector<1x16xi32>
    %11 = arith.cmpi slt, %9, %10 : vector<1x16xi32>
    %12 = arith.extui %11 : vector<1x16xi1> to vector<1x16xi32>
    %13 = arith.sitofp %12 : vector<1x16xi32> to vector<1x16xf32>
    %cst_5 = arith.constant dense<0.000000e+00> : vector<1x128xf32>
    %14 = tpu.matmul %13, %5, %cst_5 {dimension_numbers = #tpu.dot_dimension_numbers<[1], [0], [0], [1], [0, 0, 1, 1], [], []>} : vector<1x16xf32>, vector<16x128xf32>, vector<1x128xf32> -> vector<1x128xf32>
    %15 = arith.mulf %5, %5 : vector<16x128xf32>
    %cst_6 = arith.constant dense<0.000000e+00> : vector<1x128xf32>
    %16 = tpu.matmul %13, %15, %cst_6 {dimension_numbers = #tpu.dot_dimension_numbers<[1], [0], [0], [1], [0, 0, 1, 1], [], []>} : vector<1x16xf32>, vector<16x128xf32>, vector<1x128xf32> -> vector<1x128xf32>
    %c0_i32 = arith.constant 0 : i32
    %17 = arith.cmpi eq, %arg0, %c0_i32 : i32
    %18 = arith.extui %17 : i1 to i32
    %c0_i32_7 = arith.constant 0 : i32
    %19 = arith.cmpi ne, %18, %c0_i32_7 : i32
    scf.if %19 {
      %cst_16 = arith.constant 0.000000e+00 : f32
      %26 = vector.broadcast %cst_16 : f32 to vector<1x128xf32>
      %c0_17 = arith.constant 0 : index
      %c0_18 = arith.constant 0 : index
      %27 = vector.load %arg4[%c0_17, %c0_18] : memref<1x128xf32, #tpu.memory_space<vmem>>, vector<1x128xf32>
      tpu.vector_store %arg4[%c0_17, %c0_18], %26 {strides = array<i32>} : memref<1x128xf32, #tpu.memory_space<vmem>>, vector<1x128xf32>,
      %cst_19 = arith.constant 0.000000e+00 : f32
      %28 = vector.broadcast %cst_19 : f32 to vector<1x128xf32>
      %c0_20 = arith.constant 0 : index
      %c0_21 = arith.constant 0 : index
      %29 = vector.load %arg5[%c0_20, %c0_21] : memref<1x128xf32, #tpu.memory_space<vmem>>, vector<1x128xf32>
      tpu.vector_store %arg5[%c0_20, %c0_21], %28 {strides = array<i32>} : memref<1x128xf32, #tpu.memory_space<vmem>>, vector<1x128xf32>,
    } else {
    }
    %c0_8 = arith.constant 0 : index
    %c0_9 = arith.constant 0 : index
    %20 = vector.load %arg4[%c0_8, %c0_9] : memref<1x128xf32, #tpu.memory_space<vmem>>, vector<1x128xf32>
    %21 = arith.addf %20, %14 : vector<1x128xf32>
    %c0_10 = arith.constant 0 : index
    %c0_11 = arith.constant 0 : index
    %22 = vector.load %arg4[%c0_10, %c0_11] : memref<1x128xf32, #tpu.memory_space<vmem>>, vector<1x128xf32>
    tpu.vector_store %arg4[%c0_10, %c0_11], %21 {strides = array<i32>} : memref<1x128xf32, #tpu.memory_space<vmem>>, vector<1x128xf32>,
    %c0_12 = arith.constant 0 : index
    %c0_13 = arith.constant 0 : index
    %23 = vector.load %arg5[%c0_12, %c0_13] : memref<1x128xf32, #tpu.memory_space<vmem>>, vector<1x128xf32>
    %24 = arith.addf %23, %16 : vector<1x128xf32>
    %c0_14 = arith.constant 0 : index
    %c0_15 = arith.constant 0 : index
    %25 = vector.load %arg5[%c0_14, %c0_15] : memref<1x128xf32, #tpu.memory_space<vmem>>, vector<1x128xf32>
    tpu.vector_store %arg5[%c0_14, %c0_15], %24 {strides = array<i32>} : memref<1x128xf32, #tpu.memory_space<vmem>>, vector<1x128xf32>,
    return
  }
  func.func @transform_0(%arg0: i32) -> (i32, i32) {
    %c0_i32 = arith.constant 0 : i32
    %c0_i32_0 = arith.constant 0 : i32
    return %arg0, %c0_i32 : i32, i32
  }
  func.func @transform_1(%arg0: i32) -> (i32, i32) {
    %c0_i32 = arith.constant 0 : i32
    %c0_i32_0 = arith.constant 0 : i32
    %c0_i32_1 = arith.constant 0 : i32
    return %c0_i32, %c0_i32_0 : i32, i32
  }
  func.func @transform_2(%arg0: i32) -> (i32, i32) {
    %c0_i32 = arith.constant 0 : i32
    %c0_i32_0 = arith.constant 0 : i32
    %c0_i32_1 = arith.constant 0 : i32
    return %c0_i32, %c0_i32_0 : i32, i32
  }
  func.func @transform_3(%arg0: i32) -> (i32, i32) {
    %c0_i32 = arith.constant 0 : i32
    %c0_i32_0 = arith.constant 0 : i32
    %c0_i32_1 = arith.constant 0 : i32
    return %c0_i32, %c0_i32_0 : i32, i32
  }
  func.func @transform_4(%arg0: i32) -> (i32, i32) {
    %c0_i32 = arith.constant 0 : i32
    %c0_i32_0 = arith.constant 0 : i32
    %c0_i32_1 = arith.constant 0 : i32
    return %c0_i32, %c0_i32_0 : i32, i32
  }
}

module attributes {stable_mosaic.version = 11 : i64} {
  func.func @_apply_kernel(%arg0: i32, %arg1: memref<16x128xf32, #tpu.memory_space<vmem>>, %arg2: memref<128x128xf32, #tpu.memory_space<vmem>>, %arg3: memref<1x128xf32, #tpu.memory_space<vmem>>, %arg4: memref<16x128xf32, #tpu.memory_space<vmem>>) attributes {dimension_semantics = [#tpu.dimension_semantics<parallel>], iteration_bounds = array<i64: 3>, scalar_prefetch = 0 : i64, scratch_operands = 0 : i64, tpu.core_type = #tpu.core_type<tc>, window_params = [{transform_indices = @transform_0, window_bounds = array<i64: 16, 128>}, {pipeline_mode = #tpu.pipeline_mode<synchronous>, transform_indices = @transform_1, window_bounds = array<i64: 128, 128>}, {pipeline_mode = #tpu.pipeline_mode<synchronous>, transform_indices = @transform_2, window_bounds = array<i64: 1, 128>}, {transform_indices = @transform_3, window_bounds = array<i64: 16, 128>}]} {
    %c0 = arith.constant 0 : index
    %c0_0 = arith.constant 0 : index
    %0 = vector.load %arg1[%c0, %c0_0] : memref<16x128xf32, #tpu.memory_space<vmem>>, vector<16x128xf32>
    %c0_1 = arith.constant 0 : index
    %c0_2 = arith.constant 0 : index
    %1 = vector.load %arg2[%c0_1, %c0_2] : memref<128x128xf32, #tpu.memory_space<vmem>>, vector<128x128xf32>
    %cst = arith.constant dense<0.000000e+00> : vector<16x128xf32>
    %2 = tpu.matmul %0, %1, %cst {dimension_numbers = #tpu.dot_dimension_numbers<[1], [0], [0], [1], [0, 0, 1, 1], [], []>} : vector<16x128xf32>, vector<128x128xf32>, vector<16x128xf32> -> vector<16x128xf32>
    %c0_3 = arith.constant 0 : index
    %c0_4 = arith.constant 0 : index
    %3 = vector.load %arg3[%c0_3, %c0_4] : memref<1x128xf32, #tpu.memory_space<vmem>>, vector<1x128xf32>
    %4 = vector.broadcast %3 : vector<1x128xf32> to vector<16x128xf32>
    %5 = arith.addf %2, %4 : vector<16x128xf32>
    %cst_5 = arith.constant 0.000000e+00 : f32
    %6 = vector.broadcast %cst_5 : f32 to vector<16x128xf32>
    %7 = arith.maximumf %5, %6 : vector<16x128xf32>
    %c0_6 = arith.constant 0 : index
    %c0_7 = arith.constant 0 : index
    %8 = vector.load %arg4[%c0_6, %c0_7] : memref<16x128xf32, #tpu.memory_space<vmem>>, vector<16x128xf32>
    tpu.vector_store %arg4[%c0_6, %c0_7], %7 {strides = array<i32>} : memref<16x128xf32, #tpu.memory_space<vmem>>, vector<16x128xf32>,
    return
  }
  func.func @transform_0(%arg0: i32) -> (i32, i32) {
    %c0_i32 = arith.constant 0 : i32
    %c0_i32_0 = arith.constant 0 : i32
    return %arg0, %c0_i32 : i32, i32
  }
  func.func @transform_1(%arg0: i32) -> (i32, i32) {
    %c0_i32 = arith.constant 0 : i32
    %c0_i32_0 = arith.constant 0 : i32
    %c0_i32_1 = arith.constant 0 : i32
    return %c0_i32, %c0_i32_0 : i32, i32
  }
  func.func @transform_2(%arg0: i32) -> (i32, i32) {
    %c0_i32 = arith.constant 0 : i32
    %c0_i32_0 = arith.constant 0 : i32
    %c0_i32_1 = arith.constant 0 : i32
    return %c0_i32, %c0_i32_0 : i32, i32
  }
  func.func @transform_3(%arg0: i32) -> (i32, i32) {
    %c0_i32 = arith.constant 0 : i32
    %c0_i32_0 = arith.constant 0 : i32
    return %arg0, %c0_i32 : i32, i32
  }
}

</mosaic_0001>

<bundles_post_ra>
// kernel: fea_propagate_forward.5
= control target key start
LH: loop header
LB: loop body
LE: loop exit
PB: predicated region body
PF: predicated region fallthrough
CT: control target
= control target key end

     0   :  { %s467_s12 = smov 0   ;;  %s542_s0 = inlined_call_operand.vmem [shape: f32[48,128], index: 0, kind: input, shape index: {}]   ;;  %s543_s1 = inlined_call_operand.vmem [shape: f32[128,128], index: 1, kind: input, shape index: {}]   ;;  %s544_s2 = inlined_call_operand.vmem [shape: f32[1,128], index: 2, kind: input, shape index: {}]   ;;  %s545_s3 = inlined_call_operand.vmem [shape: f32[48,128], index: 3, kind: output, shape index: {}]  }
   0x1 LB: > { %s334_s13 = sadd.s32 4294967295, %s445_s12   ;;  %p338_p0 = scmp.ge.s32.totalorder %s445_s12, 1  ;;  %s445_s12 = sphi %s467_s12, %s13_s12  }
   0x2   : > { %p138_p1 = scmp.lt.s32.totalorder %s445_s12, 4 }
   0x4   : > { %p139_p2 = pnand %p338_p0, %p138_p1 }
   0x5   : > { %v176_v0 = vld [vmem:[%s543_s1] sm:$0xff] (!%p139_p2)  ;;  %v177_v1 = vld [vmem:[%s543_s1 + $0x8] sm:$0xff] (!%p139_p2)  ;;  %v178_v2 = vld [vmem:[%s543_s1 + $0x10] sm:$0xff] (!%p139_p2)  ;;  %s339_s20 = sshll.u32 (!%p139_p2), %s334_s13, 1 }
   0x6   : > { %142 = sbr.rel (%p139_p2) target bundleno = 258 (0x102), region = 32  ;;  %v399_v3 = vpack.c.bf16 (!%p139_p2), %v177_v1, %v176_v0  ;;  %v179_v4 = vld [vmem:[%s543_s1 + $0x18] sm:$0xff] (!%p139_p2)  ;;  %p163_p3 = scmp.lt.s32.totalorder (!%p139_p2), %s339_s20, 5  ;;  %v180_v6 = vld [vmem:[%s543_s1 + $0x20] sm:$0xff] (!%p139_p2)  ;;  %v181_v7 = vld [vmem:[%s543_s1 + $0x28] sm:$0xff] (!%p139_p2) }
   0x7   : > { %v403_v5 = vpack.c.bf16 (!%p139_p2), %v179_v4, %v178_v2  ;;  %v407_v8 = vpack.c.bf16 (!%p139_p2), %v181_v7, %v180_v6  ;;  %v182_v9 = vld [vmem:[%s543_s1 + $0x30] sm:$0xff] (!%p139_p2)  ;;  %v183_v10 = vld [vmem:[%s543_s1 + $0x38] sm:$0xff] (!%p139_p2)  ;;  %v184_v13 = vld [vmem:[%s543_s1 + $0x40] sm:$0xff] (!%p139_p2) }
   0x8   : > { %400 = vmatprep.subr.bf16.mxu0 (!%p139_p2), %v399_v3  ;;  %v411_v12 = vpack.c.bf16 (!%p139_p2), %v183_v10, %v182_v9  ;;  %v185_v14 = vld [vmem:[%s543_s1 + $0x48] sm:$0xff] (!%p139_p2)  ;;  %v186_v16 = vld [vmem:[%s543_s1 + $0x50] sm:$0xff] (!%p139_p2)  ;;  %v187_v17 = vld [vmem:[%s543_s1 + $0x58] sm:$0xff] (!%p139_p2) }
   0x9   : > { %402 = vmatpush3.bf16.msra.mxu0 (!%p139_p2), %v399_v3  ;;  %v415_v15 = vpack.c.bf16 (!%p139_p2), %v185_v14, %v184_v13  ;;  %v419_v18 = vpack.c.bf16 (!%p139_p2), %v187_v17, %v186_v16  ;;  %v188_v19 = vld [vmem:[%s543_s1 + $0x60] sm:$0xff] (!%p139_p2)  ;;  %v189_v20 = vld [vmem:[%s543_s1 + $0x68] sm:$0xff] (!%p139_p2)  ;;  %v190_v22 = vld [vmem:[%s543_s1 + $0x70] sm:$0xff] (!%p139_p2) }
   0xa   : > { %404 = vmatprep.subr.bf16.mxu0 (!%p139_p2), %v403_v5  ;;  %v423_v21 = vpack.c.bf16 (!%p139_p2), %v189_v20, %v188_v19  ;;  %v191_v23 = vld [vmem:[%s543_s1 + $0x78] sm:$0xff] (!%p139_p2)  ;;  %v343_v26 = vld [vmem:[%s544_s2] ss:$0 sm:$0xff] (!%p139_p2) }
   0xb   : > { %v427_v24 = vpack.c.bf16 (!%p139_p2), %v191_v23, %v190_v22 }
   0xd   : > { %s547_s20 = smov (!%p163_p3, %s339_s20), 5  ;;  %406 = vmatpush3.bf16.msra.mxu0 %v403_v5 }
   0xe   : > { %s340_s27 = sshll.u32 %s547_s20, 3  ;;  %408 = vmatprep.subr.bf16.mxu0 %v407_v8 }
   0xf   : > { %s166_s7 = scalar_lea.vmem %s542_s0, %s340_s27  ;;  %s172_s4 = scalar_lea.vmem %s545_s3, %s340_s27 }
  0x10   : > { %v174_v11 = vld [vmem:[%s166_s7] sm:$0xff]  ;;  %v175_v25 = vld [vmem:[%s166_s7 + $0x8] sm:$0xff] }
  0x11   : > { %396 = vmatprep.mubr.f32.mxu0 %v174_v11  ;;  %410 = vmatpush3.bf16.msra.mxu0 %v407_v8 }
  0x12   : > { %412 = vmatprep.subr.bf16.mxu0 %v411_v12 }
  0x15   : > { %414 = vmatpush3.bf16.msra.mxu0 %v411_v12 }
  0x16   : > { %416 = vmatprep.subr.bf16.mxu0 %v415_v15 }
  0x19   : > { %418 = vmatpush3.bf16.msra.mxu0 %v415_v15 }
  0x1a   : > { %420 = vmatprep.subr.bf16.mxu0 %v419_v18 }
  0x1d   : > { %422 = vmatpush3.bf16.msra.mxu0 %v419_v18 }
  0x1e   : > { %424 = vmatprep.subr.bf16.mxu0 %v423_v21 }
  0x21   : > { %426 = vmatpush3.bf16.msra.mxu0 %v423_v21 }
  0x22   : > { %428 = vmatprep.subr.bf16.mxu0 %v427_v24 }
  0x25   : > { %430 = vmatpush3.bf16.msra.mxu0 %v427_v24 }
  0x28   : > { %397 = vmatmul.mubr.f32.vlgmr.msra.gmra.mrb[0].mxu0 %v175_v25 }
  0xfb   : > { %v398_v27 = vpop.f32.mrb[0].mxu0 }
  0xfc   : > { %v271_v28 = vadd.f32 %v398_v27, %v343_v26  ;;  %v265_v29 = vpop.f32.mrb[1].mxu0 }
  0xfd   : > { %v266_v30 = vadd.f32 %v343_v26, %v265_v29 }
  0xfe   : > { %v275_v32 = vmax.f32 %v271_v28, 0.0 }
  0xff   : > { %v274_v31 = vmax.f32 %v266_v30, 0.0 }
 0x100   : > { %277 = vst [vmem:[%s172_s4 + $0x8] sm:$0xff] %v275_v32 }
 0x101   : > { %276 = vst [vmem:[%s172_s4] sm:$0xff] %v274_v31 }
 0x102 PF: > { %s13_s12 = sadd.s32 1, %s445_s12  }
 0x103   : > { %p10_p4 = scmp.ge.s32.totalorder %s13_s12, 5  }
 0x105   :  { %12 = sbr.rel (!%p10_p4) target bundleno = 1 (0x1), region = 62 }

// kernel: fea_propagate_forward.4
= control target key start
LH: loop header
LB: loop body
LE: loop exit
PB: predicated region body
PF: predicated region fallthrough
CT: control target
= control target key end

     0   :  { %s657_s15 = smov 0   ;;  %s747_s0 = inlined_call_operand.vmem [shape: f32[48,128], index: 0, kind: input, shape index: {}]   ;;  %s748_s1 = inlined_call_operand.vmem [shape: f32[128,128], index: 1, kind: input, shape index: {}]   ;;  %s749_s2 = inlined_call_operand.vmem [shape: f32[1,128], index: 2, kind: input, shape index: {}]   ;;  %s750_s3 = inlined_call_operand.vmem [shape: f32[1,128], index: 3, kind: output, shape index: {0}]   ;;  %s751_s4 = inlined_call_operand.vmem [shape: f32[1,128], index: 4, kind: output, shape index: {1}]  }
   0x1 LB: > { %s663_s16 = sadd.s32 4294967295, %s626_s15   ;;  %p486_p0 = scmp.ge.s32.totalorder %s626_s15, 1  ;;  %s626_s15 = sphi %s657_s15, %s15_s15  }
   0x2   : > { %p156_p1 = scmp.lt.s32.totalorder %s626_s15, 4 }
   0x4   : > { %p157_p2 = pnand %p486_p0, %p156_p1 }
   0x5   : > { %v185_v0 = vld [vmem:[%s748_s1] sm:$0xff] (!%p157_p2)  ;;  %v186_v1 = vld [vmem:[%s748_s1 + $0x8] sm:$0xff] (!%p157_p2)  ;;  %v187_v2 = vld [vmem:[%s748_s1 + $0x10] sm:$0xff] (!%p157_p2)  ;;  %s487_s23 = sshll.u32 (!%p157_p2), %s663_s16, 1  ;;  %v628_v26 = vmov (!%p157_p2), 0.0|0.0   ;;  %vm629_vm0 = vmmov (!%p157_p2), 0   ;;  %v284_v28 = vlaneseq (!%p157_p2) }
   0x6   : > { %160 = sbr.rel (%p157_p2) target bundleno = 482 (0x1e2), region = 32  ;;  %v570_v3 = vpack.c.bf16 (!%p157_p2), %v186_v1, %v185_v0  ;;  %v188_v4 = vld [vmem:[%s748_s1 + $0x18] sm:$0xff] (!%p157_p2)  ;;  %p178_p3 = scmp.lt.s32.totalorder (!%p157_p2), %s487_s23, 5  ;;  %v189_v6 = vld [vmem:[%s748_s1 + $0x20] sm:$0xff] (!%p157_p2)  ;;  %v190_v7 = vld [vmem:[%s748_s1 + $0x28] sm:$0xff] (!%p157_p2)  ;;  %602 = vmatprep.subr.bf16.mxu1 (!%p157_p2), %v628_v26  ;;  %v630_v27 = vmov (!%p157_p2), 0.0  }
   0x7   : > { %v574_v5 = vpack.c.bf16 (!%p157_p2), %v188_v4, %v187_v2  ;;  %v578_v8 = vpack.c.bf16 (!%p157_p2), %v190_v7, %v189_v6  ;;  %v191_v9 = vld [vmem:[%s748_s1 + $0x30] sm:$0xff] (!%p157_p2)  ;;  %v192_v10 = vld [vmem:[%s748_s1 + $0x38] sm:$0xff] (!%p157_p2)  ;;  %v193_v13 = vld [vmem:[%s748_s1 + $0x40] sm:$0xff] (!%p157_p2)  ;;  %560 = vmatprep.mubr.msk.f32.mxu1 (!%p157_p2), %vm629_vm0, %v630_v27  ;;  %v285_v29 = vand.u32 (!%p157_p2), 127, %v284_v28  ;;  %vm291_vm2 = vcmask (!%p157_p2), 130048   ;;  %p494_p4 = scmp.ne.s32.totalorder (!%p157_p2), %s663_s16, 0 }
   0x8   : > { %571 = vmatprep.subr.bf16.mxu0 (!%p157_p2), %v570_v3  ;;  %v582_v12 = vpack.c.bf16 (!%p157_p2), %v192_v10, %v191_v9  ;;  %v194_v14 = vld [vmem:[%s748_s1 + $0x48] sm:$0xff] (!%p157_p2)  ;;  %v195_v16 = vld [vmem:[%s748_s1 + $0x50] sm:$0xff] (!%p157_p2)  ;;  %v196_v17 = vld [vmem:[%s748_s1 + $0x58] sm:$0xff] (!%p157_p2) }
   0x9   : > { %573 = vmatpush3.bf16.msra.mxu0 (!%p157_p2), %v570_v3  ;;  %v586_v15 = vpack.c.bf16 (!%p157_p2), %v194_v14, %v193_v13  ;;  %v590_v18 = vpack.c.bf16 (!%p157_p2), %v196_v17, %v195_v16  ;;  %v197_v19 = vld [vmem:[%s748_s1 + $0x60] sm:$0xff] (!%p157_p2)  ;;  %v198_v20 = vld [vmem:[%s748_s1 + $0x68] sm:$0xff] (!%p157_p2)  ;;  %v199_v22 = vld [vmem:[%s748_s1 + $0x70] sm:$0xff] (!%p157_p2) }
   0xa   : > { %575 = vmatprep.subr.bf16.mxu0 (!%p157_p2), %v574_v5  ;;  %v594_v21 = vpack.c.bf16 (!%p157_p2), %v198_v20, %v197_v19  ;;  %v200_v23 = vld [vmem:[%s748_s1 + $0x78] sm:$0xff] (!%p157_p2)  ;;  %v489_v31 = vld [vmem:[%s749_s2] ss:$0 sm:$0xff] (!%p157_p2) }
   0xb   : > { %v598_v24 = vpack.c.bf16 (!%p157_p2), %v200_v23, %v199_v22 }
   0xd   : > { %s753_s23 = smov (!%p178_p3, %s487_s23), 5  ;;  %577 = vmatpush3.bf16.msra.mxu0 %v574_v5  ;;  %v631_v46 = vmov (!%p494_p4), 0.0  }
   0xe   : > { %s488_s30 = sshll.u32 %s753_s23, 3  ;;  %579 = vmatprep.subr.bf16.mxu0 %v578_v8  ;;  %441 = vst [vmem:[%s750_s3] sm:$0x1] (!%p494_p4), %v631_v46  ;;  %442 = vst [vmem:[%s751_s4] sm:$0x1] (!%p494_p4), %v631_v46 }
   0xf   : > { %s181_s11 = scalar_lea.vmem %s747_s0, %s488_s30  ;;  %s490_s30 = sshll.u32 %s663_s16, 4 }
  0x10   : > { %v183_v11 = vld [vmem:[%s181_s11] sm:$0xff]  ;;  %v184_v25 = vld [vmem:[%s181_s11 + $0x8] sm:$0xff]  ;;  %v286_v30 = vstv %s490_s30 }
  0x11   : > { %553 = vmatprep.mubr.f32.mxu0 %v183_v11  ;;  %581 = vmatpush3.bf16.msra.mxu0 %v578_v8  ;;  %v287_v32 = vadd.s32 %v286_v30, %v285_v29 }
  0x12   : > { %583 = vmatprep.subr.bf16.mxu0 %v582_v12 }
  0x13   : > { %vm288_vm1 = vcmp.lt.s32.totalorder %v287_v32, 40 }
  0x14   : > { %v491_v41 = vsel %vm288_vm1, 1.0, %v630_v27 }
  0x15   : > { %585 = vmatpush3.bf16.msra.mxu0 %v582_v12 }
  0x16   : > { %587 = vmatprep.subr.bf16.mxu0 %v586_v15 }
  0x19   : > { %589 = vmatpush3.bf16.msra.mxu0 %v586_v15 }
  0x1a   : > { %591 = vmatprep.subr.bf16.mxu0 %v590_v18 }
  0x1d   : > { %593 = vmatpush3.bf16.msra.mxu0 %v590_v18 }
  0x1e   : > { %595 = vmatprep.subr.bf16.mxu0 %v594_v21 }
  0x21   : > { %597 = vmatpush3.bf16.msra.mxu0 %v594_v21 }
  0x22   : > { %599 = vmatprep.subr.bf16.mxu0 %v598_v24 }
  0x25   : > { %601 = vmatpush3.bf16.msra.mxu0 %v598_v24 }
  0x28   : > { %554 = vmatmul.mubr.f32.vlgmr.msra.gmra.mrb[0].mxu0 %v184_v25 }
  0xfb   : > { %v555_v33 = vpop.f32.mrb[0].mxu0 }
  0xfc   : > { %v280_v34 = vadd.f32 %v555_v33, %v489_v31  ;;  %v274_v35 = vpop.f32.mrb[1].mxu0 }
  0xfd   : > { %v275_v36 = vadd.f32 %v489_v31, %v274_v35 }
  0xfe   : > { %v366_v37 = vmul.f32 %v280_v34, %v280_v34 }
  0xff   : > { %v365_v38 = vmul.f32 %v275_v36, %v275_v36  ;;  %v603_v39 = vpack.c.bf16 %v280_v34, %v275_v36 }
 0x101   : > { %v606_v40 = vpack.c.bf16 %v366_v37, %v365_v38  ;;  %604 = vmatpush3.bf16.msra.mxu1 %v603_v39 }
 0x102   : > { %605 = vmatprep.subr.bf16.mxu1 %v628_v26 }
 0x104   : > { %561 = vmatmul.mubr.msk.f32.vlgmr.msra.gmra.mrb[0].mxu1 %vm291_vm2, %v491_v41 }
 0x105   : > { %607 = vmatpush3.bf16.msra.mxu1 %v606_v40  ;;  %567 = vmatprep.mubr.msk.f32.mxu1 %vm629_vm0, %v630_v27 }
 0x108   : > { %568 = vmatmul.mubr.msk.f32.vlgmr.msra.gmra.mrb[2].mxu1 %vm291_vm2, %v491_v41 }
 0x1d6   : > { %440 = sbr.rel (%p494_p4) target bundleno = 477 (0x1dd), region = 36 }
 0x1d7   : > { %v361_v42 = vpop.f32.mrb[0].mxu1 }
 0x1d8   : > { %v562_v43 = vpop.f32.mrb[1].mxu1 }
 0x1db   : > { %v433_v44 = vpop.f32.mrb[2].mxu1 }
 0x1dc   : > { %v569_v45 = vpop.f32.mrb[3].mxu1 }
 0x1dd PF: > { %v443_v47 = vld [vmem:[%s750_s3] sm:$0x1] }
 0x1de   : > { %v446_v48 = vld [vmem:[%s751_s4] sm:$0x1]  ;;  %v444_v49 = vadd.f32 %v443_v47, %v361_v42 }
 0x1df   : > { %v447_v50 = vadd.f32 %v446_v48, %v433_v44 }
 0x1e0   : > { %445 = vst [vmem:[%s750_s3] sm:$0x1] %v444_v49 }
 0x1e1   : > { %448 = vst [vmem:[%s751_s4] sm:$0x1] %v447_v50 }
 0x1e2 PF: > { %s15_s15 = sadd.s32 1, %s626_s15  }
 0x1e3   : > { %p12_p5 = scmp.ge.s32.totalorder %s15_s15, 5  }
 0x1e5   :  { %14 = sbr.rel (!%p12_p5) target bundleno = 1 (0x1), region = 70 }

</bundles_post_ra>
